<compile_context>
chip_gen: v7x
topology: tpu7x:2x2x1
jax: 0.10.0
libtpu: 0.0.40
codegen_flags: <defaults>
</compile_context>

<pallas_src>
import functools

import jax
import jax.numpy as jnp
from jax import lax
from jax.experimental import pallas as pl
from jax.experimental.pallas import tpu as pltpu

EPS = 1e-5
LANE = 128          # lane-dense channel padding target
TILE_M_MAX = 4096   # rows per M tile (keeps per-step VMEM ~6 MiB at Cp=128)


def conv_bn_relu_kernel(m_true, p_ref, w_ref, gamma_ref, beta_ref, o_ref,
                        sum_ref, sumsq_ref, scale_ref, shift_ref):
    # m_true   : static Python float, true (unpadded) N*Ho*Wo row count
    # p_ref    : (tile_m, K)  bf16 im2col patch tile (padded rows are all-zero)
    # w_ref    : (K, Cp)      bf16 weights, Cout zero-padded to a multiple of 128
    # gamma_ref: (1, Cp)      f32 BN weight (zero-padded)
    # beta_ref : (1, Cp)      f32 BN bias   (zero-padded)
    # o_ref    : (tile_m, Cp) bf16 output tile (only written in phase 1)
    # scratch  : (1, Cp) f32 sum / sumsq / scale / shift, persistent across grid steps
    phase = pl.program_id(0)
    j = pl.program_id(1)

    @pl.when((phase == 0) & (j == 0))
    def _():
        sum_ref[...] = jnp.zeros_like(sum_ref)
        sumsq_ref[...] = jnp.zeros_like(sumsq_ref)

    # Single MXU matmul (bf16 operands, f32 accumulation).  Recomputed in phase 1,
    # which is cheaper than round-tripping the f32 acc through HBM at this K.
    acc = jnp.dot(p_ref[...], w_ref[...], preferred_element_type=jnp.float32)

    @pl.when(phase == 0)
    def _():
        # Padded rows are exactly zero, so they add nothing to either partial.
        sum_ref[...] += jnp.sum(acc, axis=0, keepdims=True)
        sumsq_ref[...] += jnp.sum(acc * acc, axis=0, keepdims=True)

    @pl.when((phase == 1) & (j == 0))
    def _():
        inv_m = jnp.float32(1.0 / m_true)
        mean = sum_ref[...] * inv_m
        var = jnp.maximum(sumsq_ref[...] * inv_m - mean * mean, 0.0)
        scale = gamma_ref[...] * lax.rsqrt(var + EPS)        # (1, Cp)
        scale_ref[...] = scale
        shift_ref[...] = beta_ref[...] - mean * scale         # mean folded into shift

    @pl.when(phase == 1)
    def _():
        # Fused affine + ReLU: one FMA pass + one max pass over the tile.
        o_ref[...] = jnp.maximum(acc * scale_ref[...] + shift_ref[...],
                                 0.0).astype(o_ref.dtype)


@functools.partial(jax.jit, static_argnames=("padding",))
def conv_block(x_nchw, weight_oihw, bias, gamma, beta, padding=1):
    """Pallas ConvBlock forward. x_nchw: (N, Cin, H, W) -> (N, Cout, Ho, Wo) f32."""
    del bias  # exactly cancelled by training-mode BatchNorm mean subtraction
    N, Cin, H, W = x_nchw.shape
    Cout, _, KH, KW = weight_oihw.shape
    Ho = H + 2 * padding - KH + 1
    Wo = W + 2 * padding - KW + 1
    M = N * Ho * Wo
    K = KH * KW * Cin
    Cp = ((Cout + LANE - 1) // LANE) * LANE

    # M tiling: multiple of 8 sublanes, capped so 2x patch + 2x out tiles + acc fit
    # comfortably inside a 24-28 MiB budget on every generation (incl. v7x 64 MiB VMEM).
    tile_m = min(TILE_M_MAX, ((M + 7) // 8) * 8)
    Mp = ((M + tile_m - 1) // tile_m) * tile_m
    nt = Mp // tile_m

    # --- glue (plain JAX, fused under jit): NCHW -> NHWC, spatial pad, im2col,
    #     zero row padding to Mp, lane padding of channels to Cp, bf16 cast.
    # TODO(synk): replace HBM-materialized im2col with in-kernel patch formation
    # from a haloed NHWC tile for production shapes.
    x_nhwc = jnp.transpose(x_nchw, (0, 2, 3, 1)).astype(jnp.float32)
    xp = jnp.pad(x_nhwc, ((0, 0), (padding, padding), (padding, padding), (0, 0)))
    patches = jnp.concatenate(
        [xp[:, kh:kh + Ho, kw:kw + Wo, :] for kh in range(KH) for kw in range(KW)],
        axis=-1,
    ).reshape(M, K)
    patches = jnp.pad(patches, ((0, Mp - M), (0, 0))).astype(jnp.bfloat16)

    # OIHW -> (KH*KW*Cin, Cout), zero-pad channels to Cp, cast to bf16.
    w = jnp.transpose(weight_oihw, (2, 3, 1, 0)).astype(jnp.float32).reshape(K, Cout)
    w = jnp.pad(w, ((0, 0), (0, Cp - Cout))).astype(jnp.bfloat16)
    g = jnp.pad(gamma.astype(jnp.float32).reshape(1, Cout), ((0, 0), (0, Cp - Cout)))
    b = jnp.pad(beta.astype(jnp.float32).reshape(1, Cout), ((0, 0), (0, Cp - Cout)))

    cost = pl.CostEstimate(
        flops=2 * (2 * Mp * K * Cp) + 6 * Mp * Cp,      # matmul runs in both phases
        transcendentals=Cp,
        bytes_accessed=(2 * patches.size * 2 + w.size * 2
                        + (g.size + b.size) * 4 + Mp * Cp * 2),
    )

    kernel = functools.partial(conv_bn_relu_kernel, float(M))

    out_flat = pl.pallas_call(
        kernel,
        out_shape=jax.ShapeDtypeStruct((Mp, Cp), jnp.bfloat16),
        grid_spec=pltpu.PrefetchScalarGridSpec(
            num_scalar_prefetch=0,
            grid=(2, nt),                                 # (phase, M tile); phase outer
            in_specs=[
                pl.BlockSpec((tile_m, K), lambda p, j: (j, 0)),   # patches tile
                pl.BlockSpec((K, Cp), lambda p, j: (0, 0)),       # weights, resident
                pl.BlockSpec((1, Cp), lambda p, j: (0, 0)),       # gamma
                pl.BlockSpec((1, Cp), lambda p, j: (0, 0)),       # beta
            ],
            # j*p keeps every output block's visits contiguous: no writeback in phase 0,
            # each block flushed exactly once after its phase-1 write.
            out_specs=pl.BlockSpec((tile_m, Cp), lambda p, j: (j * p, 0)),
            scratch_shapes=[
                pltpu.VMEM((1, Cp), jnp.float32),   # sum
                pltpu.VMEM((1, Cp), jnp.float32),   # sumsq
                pltpu.VMEM((1, Cp), jnp.float32),   # scale
                pltpu.VMEM((1, Cp), jnp.float32),   # shift
            ],
        ),
        compiler_params=pltpu.CompilerParams(
            # Stats accumulate across both axes -> sequential ('arbitrary') for now.
            dimension_semantics=("arbitrary", "arbitrary"),
            vmem_limit_bytes=32 * 1024 * 1024,
        ),
        cost_estimate=cost,
    )(patches, w, g, b)

    out = out_flat[:M, :Cout].reshape(N, Ho, Wo, Cout)
    return jnp.transpose(out, (0, 3, 1, 2)).astype(jnp.float32)  # back to NCHW, f32


def conv_block_ref(x_nchw, weight_oihw, bias, gamma, beta, padding=1):
    """Pure-JAX f32 reference (NCHW conv + bias + training-mode BN + ReLU)."""
    y = lax.conv_general_dilated(
        x_nchw.astype(jnp.float32), weight_oihw.astype(jnp.float32),
        window_strides=(1, 1), padding=[(padding, padding), (padding, padding)],
        dimension_numbers=("NCHW", "OIHW", "NCHW"),
    ) + bias.reshape(1, -1, 1, 1)
    mean = jnp.mean(y, axis=(0, 2, 3), keepdims=True)
    var = jnp.mean((y - mean) ** 2, axis=(0, 2, 3), keepdims=True)
    y_hat = (y - mean) * lax.rsqrt(var + EPS)
    out = gamma.reshape(1, -1, 1, 1) * y_hat + beta.reshape(1, -1, 1, 1)
    return jnp.maximum(out, 0.0)


if __name__ == "__main__":
    # Shapes consistent with ConvBlock(in_channel=4, out_channel=8, kernel_size=3, padding=1)
    N, Cin, H, W = 2, 4, 16, 16
    Cout, Ksz, PAD = 8, 3, 1

    key = jax.random.PRNGKey(0)
    kx, kw, kb, kg, kbe = jax.random.split(key, 5)

    x = jax.random.normal(kx, (N, Cin, H, W), jnp.float32)
    bound = 1.0 / (Cin * Ksz * Ksz) ** 0.5
    weight = jax.random.uniform(kw, (Cout, Cin, Ksz, Ksz), jnp.float32, -bound, bound)
    bias = jax.random.uniform(kb, (Cout,), jnp.float32, -bound, bound)
    gamma = 1.0 + 0.1 * jax.random.normal(kg, (Cout,), jnp.float32)   # BN weight
    beta = 0.1 * jax.random.normal(kbe, (Cout,), jnp.float32)         # BN bias

    out = jax.block_until_ready(conv_block(x, weight, bias, gamma, beta, padding=PAD))
    ref = jax.block_until_ready(conv_block_ref(x, weight, bias, gamma, beta, padding=PAD))

    assert out.shape == (N, Cout, H, W), out.shape
    # Tolerance reflects bf16 MXU operands + bf16 output vs. pure-f32 reference.
    assert jnp.allclose(out, ref, rtol=2e-2, atol=2e-2), float(jnp.max(jnp.abs(out - ref)))

    print("KERNEL_OK")
</pallas_src>

<mosaic_0001>
module attributes {stable_mosaic.version = 11 : i64} {
  func.func @conv_bn_relu_kernel(%arg0: i32, %arg1: i32, %arg2: memref<512x36xbf16, #tpu.memory_space<vmem>>, %arg3: memref<36x128xbf16, #tpu.memory_space<vmem>>, %arg4: memref<1x128xf32, #tpu.memory_space<vmem>>, %arg5: memref<1x128xf32, #tpu.memory_space<vmem>>, %arg6: memref<512x128xbf16, #tpu.memory_space<vmem>>, %arg7: memref<1x128xf32, #tpu.memory_space<vmem>>, %arg8: memref<1x128xf32, #tpu.memory_space<vmem>>, %arg9: memref<1x128xf32, #tpu.memory_space<vmem>>, %arg10: memref<1x128xf32, #tpu.memory_space<vmem>>) attributes {dimension_semantics = [#tpu.dimension_semantics<arbitrary>, #tpu.dimension_semantics<arbitrary>], iteration_bounds = array<i64: 2, 1>, scalar_prefetch = 0 : i64, scratch_operands = 4 : i64, tpu.core_type = #tpu.core_type<tc>, window_params = [{transform_indices = @transform_0, window_bounds = array<i64: 512, 36>}, {pipeline_mode = #tpu.pipeline_mode<synchronous>, transform_indices = @transform_1, window_bounds = array<i64: 36, 128>}, {pipeline_mode = #tpu.pipeline_mode<synchronous>, transform_indices = @transform_2, window_bounds = array<i64: 1, 128>}, {pipeline_mode = #tpu.pipeline_mode<synchronous>, transform_indices = @transform_3, window_bounds = array<i64: 1, 128>}, {transform_indices = @transform_4, window_bounds = array<i64: 512, 128>}]} {
    %c0_i32 = arith.constant 0 : i32
    %0 = arith.cmpi eq, %arg0, %c0_i32 : i32
    %c0_i32_0 = arith.constant 0 : i32
    %1 = arith.cmpi eq, %arg1, %c0_i32_0 : i32
    %2 = arith.andi %0, %1 : i1
    %3 = arith.extui %2 : i1 to i32
    %c0_i32_1 = arith.constant 0 : i32
    %4 = arith.cmpi ne, %3, %c0_i32_1 : i32
    scf.if %4 {
      %cst_11 = arith.constant 0.000000e+00 : f32
      %19 = vector.broadcast %cst_11 : f32 to vector<1x128xf32>
      %c0_12 = arith.constant 0 : index
      %c0_13 = arith.constant 0 : index
      %20 = vector.load %arg7[%c0_12, %c0_13] : memref<1x128xf32, #tpu.memory_space<vmem>>, vector<1x128xf32>
      tpu.vector_store %arg7[%c0_12, %c0_13], %19 {strides = array<i32>} : memref<1x128xf32, #tpu.memory_space<vmem>>, vector<1x128xf32>,
      %cst_14 = arith.constant 0.000000e+00 : f32
      %21 = vector.broadcast %cst_14 : f32 to vector<1x128xf32>
      %c0_15 = arith.constant 0 : index
      %c0_16 = arith.constant 0 : index
      %22 = vector.load %arg8[%c0_15, %c0_16] : memref<1x128xf32, #tpu.memory_space<vmem>>, vector<1x128xf32>
      tpu.vector_store %arg8[%c0_15, %c0_16], %21 {strides = array<i32>} : memref<1x128xf32, #tpu.memory_space<vmem>>, vector<1x128xf32>,
    } else {
    }
    %c0 = arith.constant 0 : index
    %c0_2 = arith.constant 0 : index
    %5 = vector.load %arg2[%c0, %c0_2] : memref<512x36xbf16, #tpu.memory_space<vmem>>, vector<512x36xbf16>
    %c0_3 = arith.constant 0 : index
    %c0_4 = arith.constant 0 : index
    %6 = vector.load %arg3[%c0_3, %c0_4] : memref<36x128xbf16, #tpu.memory_space<vmem>>, vector<36x128xbf16>
    %cst = arith.constant dense<0.000000e+00> : vector<512x128xf32>
    %7 = tpu.matmul %5, %6, %cst {dimension_numbers = #tpu.dot_dimension_numbers<[1], [0], [0], [1], [0, 0, 1, 1], [], []>} : vector<512x36xbf16>, vector<36x128xbf16>, vector<512x128xf32> -> vector<512x128xf32>
    %c0_i32_5 = arith.constant 0 : i32
    %8 = arith.cmpi eq, %arg0, %c0_i32_5 : i32
    %9 = arith.extui %8 : i1 to i32
    %c0_i32_6 = arith.constant 0 : i32
    %10 = arith.cmpi ne, %9, %c0_i32_6 : i32
    scf.if %10 {
      %c0_11 = arith.constant 0 : index
      %c0_12 = arith.constant 0 : index
      %19 = vector.load %arg7[%c0_11, %c0_12] : memref<1x128xf32, #tpu.memory_space<vmem>>, vector<1x128xf32>
      %cst_13 = arith.constant dense<0.000000e+00> : vector<128xf32>
      %20 = vector.multi_reduction <add>, %7, %cst_13 [0] : vector<512x128xf32> to vector<128xf32>
      %21 = vector.shape_cast %20 : vector<128xf32> to vector<1x128xf32>
      %22 = arith.addf %19, %21 : vector<1x128xf32>
      %c0_14 = arith.constant 0 : index
      %c0_15 = arith.constant 0 : index
      %23 = vector.load %arg7[%c0_14, %c0_15] : memref<1x128xf32, #tpu.memory_space<vmem>>, vector<1x128xf32>
      tpu.vector_store %arg7[%c0_14, %c0_15], %22 {strides = array<i32>} : memref<1x128xf32, #tpu.memory_space<vmem>>, vector<1x128xf32>,
      %c0_16 = arith.constant 0 : index
      %c0_17 = arith.constant 0 : index
      %24 = vector.load %arg8[%c0_16, %c0_17] : memref<1x128xf32, #tpu.memory_space<vmem>>, vector<1x128xf32>
      %25 = arith.mulf %7, %7 : vector<512x128xf32>
      %cst_18 = arith.constant dense<0.000000e+00> : vector<128xf32>
      %26 = vector.multi_reduction <add>, %25, %cst_18 [0] : vector<512x128xf32> to vector<128xf32>
      %27 = vector.shape_cast %26 : vector<128xf32> to vector<1x128xf32>
      %28 = arith.addf %24, %27 : vector<1x128xf32>
      %c0_19 = arith.constant 0 : index
      %c0_20 = arith.constant 0 : index
      %29 = vector.load %arg8[%c0_19, %c0_20] : memref<1x128xf32, #tpu.memory_space<vmem>>, vector<1x128xf32>
      tpu.vector_store %arg8[%c0_19, %c0_20], %28 {strides = array<i32>} : memref<1x128xf32, #tpu.memory_space<vmem>>, vector<1x128xf32>,
    } else {
    }
    %c1_i32 = arith.constant 1 : i32
    %11 = arith.cmpi eq, %arg0, %c1_i32 : i32
    %c0_i32_7 = arith.constant 0 : i32
    %12 = arith.cmpi eq, %arg1, %c0_i32_7 : i32
    %13 = arith.andi %11, %12 : i1
    %14 = arith.extui %13 : i1 to i32
    %c0_i32_8 = arith.constant 0 : i32
    %15 = arith.cmpi ne, %14, %c0_i32_8 : i32
    scf.if %15 {
      %c0_11 = arith.constant 0 : index
      %c0_12 = arith.constant 0 : index
      %19 = vector.load %arg7[%c0_11, %c0_12] : memref<1x128xf32, #tpu.memory_space<vmem>>, vector<1x128xf32>
      %cst_13 = arith.constant 0.001953125 : f32
      %20 = vector.broadcast %cst_13 : f32 to vector<1x128xf32>
      %21 = arith.mulf %19, %20 : vector<1x128xf32>
      %c0_14 = arith.constant 0 : index
      %c0_15 = arith.constant 0 : index
      %22 = vector.load %arg8[%c0_14, %c0_15] : memref<1x128xf32, #tpu.memory_space<vmem>>, vector<1x128xf32>
      %cst_16 = arith.constant 0.001953125 : f32
      %23 = vector.broadcast %cst_16 : f32 to vector<1x128xf32>
      %24 = arith.mulf %22, %23 : vector<1x128xf32>
      %25 = arith.mulf %21, %21 : vector<1x128xf32>
      %26 = arith.subf %24, %25 : vector<1x128xf32>
      %cst_17 = arith.constant 0.000000e+00 : f32
      %27 = vector.broadcast %cst_17 : f32 to vector<1x128xf32>
      %28 = arith.maximumf %26, %27 : vector<1x128xf32>
      %c0_18 = arith.constant 0 : index
      %c0_19 = arith.constant 0 : index
      %29 = vector.load %arg4[%c0_18, %c0_19] : memref<1x128xf32, #tpu.memory_space<vmem>>, vector<1x128xf32>
      %cst_20 = arith.constant 9.99999974E-6 : f32
      %30 = vector.broadcast %cst_20 : f32 to vector<1x128xf32>
      %31 = arith.addf %28, %30 : vector<1x128xf32>
      %32 = math.rsqrt %31 : vector<1x128xf32>
      %33 = arith.mulf %29, %32 : vector<1x128xf32>
      %c0_21 = arith.constant 0 : index
      %c0_22 = arith.constant 0 : index
      %34 = vector.load %arg9[%c0_21, %c0_22] : memref<1x128xf32, #tpu.memory_space<vmem>>, vector<1x128xf32>
      tpu.vector_store %arg9[%c0_21, %c0_22], %33 {strides = array<i32>} : memref<1x128xf32, #tpu.memory_space<vmem>>, vector<1x128xf32>,
      %c0_23 = arith.constant 0 : index
      %c0_24 = arith.constant 0 : index
      %35 = vector.load %arg5[%c0_23, %c0_24] : memref<1x128xf32, #tpu.memory_space<vmem>>, vector<1x128xf32>
      %36 = arith.mulf %21, %33 : vector<1x128xf32>
      %37 = arith.subf %35, %36 : vector<1x128xf32>
      %c0_25 = arith.constant 0 : index
      %c0_26 = arith.constant 0 : index
      %38 = vector.load %arg10[%c0_25, %c0_26] : memref<1x128xf32, #tpu.memory_space<vmem>>, vector<1x128xf32>
      tpu.vector_store %arg10[%c0_25, %c0_26], %37 {strides = array<i32>} : memref<1x128xf32, #tpu.memory_space<vmem>>, vector<1x128xf32>,
    } else {
    }
    %c1_i32_9 = arith.constant 1 : i32
    %16 = arith.cmpi eq, %arg0, %c1_i32_9 : i32
    %17 = arith.extui %16 : i1 to i32
    %c0_i32_10 = arith.constant 0 : i32
    %18 = arith.cmpi ne, %17, %c0_i32_10 : i32
    scf.if %18 {
      %c0_11 = arith.constant 0 : index
      %c0_12 = arith.constant 0 : index
      %19 = vector.load %arg9[%c0_11, %c0_12] : memref<1x128xf32, #tpu.memory_space<vmem>>, vector<1x128xf32>
      %20 = vector.broadcast %19 : vector<1x128xf32> to vector<512x128xf32>
      %21 = arith.mulf %7, %20 : vector<512x128xf32>
      %c0_13 = arith.constant 0 : index
      %c0_14 = arith.constant 0 : index
      %22 = vector.load %arg10[%c0_13, %c0_14] : memref<1x128xf32, #tpu.memory_space<vmem>>, vector<1x128xf32>
      %23 = vector.broadcast %22 : vector<1x128xf32> to vector<512x128xf32>
      %24 = arith.addf %21, %23 : vector<512x128xf32>
      %cst_15 = arith.constant 0.000000e+00 : f32
      %25 = vector.broadcast %cst_15 : f32 to vector<512x128xf32>
      %26 = arith.maximumf %24, %25 : vector<512x128xf32>
      %27 = arith.truncf %26 : vector<512x128xf32> to vector<512x128xbf16>
      %c0_16 = arith.constant 0 : index
      %c0_17 = arith.constant 0 : index
      %28 = vector.load %arg6[%c0_16, %c0_17] : memref<512x128xbf16, #tpu.memory_space<vmem>>, vector<512x128xbf16>
      tpu.vector_store %arg6[%c0_16, %c0_17], %27 {strides = array<i32>} : memref<512x128xbf16, #tpu.memory_space<vmem>>, vector<512x128xbf16>,
    } else {
    }
    return
  }
  func.func @transform_0(%arg0: i32, %arg1: i32) -> (i32, i32) {
    %c0_i32 = arith.constant 0 : i32
    %c0_i32_0 = arith.constant 0 : i32
    return %arg1, %c0_i32 : i32, i32
  }
  func.func @transform_1(%arg0: i32, %arg1: i32) -> (i32, i32) {
    %c0_i32 = arith.constant 0 : i32
    %c0_i32_0 = arith.constant 0 : i32
    %c0_i32_1 = arith.constant 0 : i32
    return %c0_i32, %c0_i32_0 : i32, i32
  }
  func.func @transform_2(%arg0: i32, %arg1: i32) -> (i32, i32) {
    %c0_i32 = arith.constant 0 : i32
    %c0_i32_0 = arith.constant 0 : i32
    %c0_i32_1 = arith.constant 0 : i32
    return %c0_i32, %c0_i32_0 : i32, i32
  }
  func.func @transform_3(%arg0: i32, %arg1: i32) -> (i32, i32) {
    %c0_i32 = arith.constant 0 : i32
    %c0_i32_0 = arith.constant 0 : i32
    %c0_i32_1 = arith.constant 0 : i32
    return %c0_i32, %c0_i32_0 : i32, i32
  }
  func.func @transform_4(%arg0: i32, %arg1: i32) -> (i32, i32) {
    %0 = arith.muli %arg1, %arg0 : i32
    %c0_i32 = arith.constant 0 : i32
    %c0_i32_0 = arith.constant 0 : i32
    return %0, %c0_i32 : i32, i32
  }
}

</mosaic_0001>

<bundles_post_ra>
// kernel: conv_block.1
= control target key start
LH: loop header
LB: loop body
LE: loop exit
PB: predicated region body
PF: predicated region fallthrough
CT: control target
= control target key end

     0   :  { %s2321_s15 = smov 0   ;;  %s2323_s16 = smov 0   ;;  %s3109_s0 = inlined_call_operand.vmem [shape: bf16[512,36], index: 0, kind: input, shape index: {}]   ;;  %s3110_s1 = inlined_call_operand.vmem [shape: bf16[36,128], index: 1, kind: input, shape index: {}]   ;;  %s3111_s2 = inlined_call_operand.vmem [shape: f32[1,128], index: 2, kind: input, shape index: {}]   ;;  %s3112_s3 = inlined_call_operand.vmem [shape: f32[1,128], index: 3, kind: input, shape index: {}]   ;;  %s3113_s4 = inlined_call_operand.vmem [shape: bf16[512,128], index: 4, kind: output, shape index: {}]  }
   0x1   :  { %s2325_s17 = smov 0  }
   0x2 LB: > { %s26_s18 = sadd.s32 1, %s2289_s16  ;;  %p1697_p0 = scmp.ge.s32.totalorder %s2293_s17, 1  ;;  %s2293_s17 = sphi %s2325_s17, %s14_s17   ;;  %s2289_s16 = sphi %s2323_s16, %s3205_s16   ;;  %s2285_s15 = sphi %s2321_s15, %s3204_s15  }
   0x3   : > { %p28_p1 = scmp.ge.s32.totalorder %s26_s18, 2  ;;  %p177_p2 = scmp.lt.s32.totalorder %s2293_s17, 3 }
   0x5   : > { %s3207_s18 = smov (%p28_p1, %s26_s18), 0  ;;  %p178_p3 = pnand %p1697_p0, %p177_p2 }
   0x7   : > { %181 = sbr.rel (%p178_p3) target bundleno = 554 (0x22a), region = 36 }
   0xe   : > { %p219_p4 = scmp.eq.s32.totalorder %s2285_s15, 0 }
   0xf   : > { %v2295_v0 = vmov (%p219_p4), 0.0  }
  0x10   : > { %224 = sbr.rel (!%p219_p4) target bundleno = 23 (0x17), region = 40  ;;  %225 = vst [vmem:[#allocation2] sm:$0x1] (%p219_p4), %v2295_v0  ;;  %226 = vst [vmem:[#allocation3] sm:$0x1] (%p219_p4), %v2295_v0 }
  0x17 PF: > { %v2234_v1 = vld [vmem:[%s3110_s1] sm:$0xff]   ;;  %v2235_v2 = vld [vmem:[%s3110_s1 + $0x8] sm:$0xff]   ;;  %vm471_vm0 = vcmask 293888   ;;  %v2236_v3 = vld [vmem:[%s3110_s1 + $0x10] ss:$0 sps:$4 sm:$0x33]  }
  0x18   : > { %2131 = vmatprep.subr.bf16.mxu0 %v2234_v1  ;;  %2201 = vmatprep.subr.bf16.mxu1 %v2234_v1  ;;  %v2237_v4 = vld [vmem:[%s3109_s0] sm:$0xff]   ;;  %vm568_vm1 = vcmask 1041408   ;;  %v2239_v7 = vld [vmem:[%s3109_s0 + $0x8] sm:$0xff]   ;;  %v2241_v9 = vld [vmem:[%s3109_s0 + $0x10] sm:$0xff]   ;;  %p1766_p5 = scmp.ne.s32.totalorder %s2285_s15, 0 }
  0x19   : > { %2132 = vmatpush3.bf16.msra.mxu0 %v2234_v1  ;;  %2204 = vmatpush3.bf16.msra.mxu1 %v2234_v1  ;;  %v2238_v5 = vld [vmem:[%s3109_s0 + $0x80] sm:$0xff]   ;;  %v570_v6 = vsel %vm568_vm1, %v2236_v3, 0  ;;  %v2240_v8 = vld [vmem:[%s3109_s0 + $0x88] sm:$0xff]   ;;  %v2242_v10 = vld [vmem:[%s3109_s0 + $0x90] sm:$0xff]  }
  0x1a   : > { %2133 = vmatprep.subr.bf16.mxu0 %v2235_v2  ;;  %2202 = vmatprep.subr.bf16.mxu1 %v2235_v2  ;;  %v2243_v11 = vld [vmem:[%s3109_s0 + $0x18] sm:$0xff]   ;;  %v2245_v13 = vld [vmem:[%s3109_s0 + $0x20] sm:$0xff]   ;;  %v2247_v15 = vld [vmem:[%s3109_s0 + $0x28] sm:$0xff]  }
  0x1b   : > { %2137 = vmatprep.mubr.msk.bf16.mxu0 %vm471_vm0, %v2237_v4  ;;  %2169 = vmatprep.mubr.msk.bf16.mxu1 %vm471_vm0, %v2238_v5  ;;  %v2244_v12 = vld [vmem:[%s3109_s0 + $0x98] sm:$0xff]   ;;  %v2246_v14 = vld [vmem:[%s3109_s0 + $0xa0] sm:$0xff]   ;;  %v2248_v16 = vld [vmem:[%s3109_s0 + $0xa8] sm:$0xff]  }
  0x1c   : > { %v2249_v17 = vld [vmem:[%s3109_s0 + $0x30] sm:$0xff]   ;;  %v2251_v19 = vld [vmem:[%s3109_s0 + $0x38] sm:$0xff]   ;;  %v2253_v21 = vld [vmem:[%s3109_s0 + $0x40] sm:$0xff]  }
  0x1d   : > { %2134 = vmatpush3.bf16.msra.mxu0 %v2235_v2  ;;  %2205 = vmatpush3.bf16.msra.mxu1 %v2235_v2  ;;  %v2250_v18 = vld [vmem:[%s3109_s0 + $0xb0] sm:$0xff]   ;;  %v2252_v20 = vld [vmem:[%s3109_s0 + $0xb8] sm:$0xff]   ;;  %v2254_v22 = vld [vmem:[%s3109_s0 + $0xc0] sm:$0xff]  }
  0x1e   : > { %2207 = vmatprep.subr.msk.bf16.mxu0 %vm568_vm1, %v2236_v3  ;;  %2208 = vmatprep.subr.msk.bf16.mxu1 %vm568_vm1, %v2236_v3  ;;  %v2255_v23 = vld [vmem:[%s3109_s0 + $0x48] sm:$0xff]   ;;  %v2257_v25 = vld [vmem:[%s3109_s0 + $0x50] sm:$0xff]   ;;  %v2259_v27 = vld [vmem:[%s3109_s0 + $0x58] sm:$0xff]  }
  0x1f   : > { %v2256_v24 = vld [vmem:[%s3109_s0 + $0xc8] sm:$0xff]   ;;  %v2258_v26 = vld [vmem:[%s3109_s0 + $0xd0] sm:$0xff]   ;;  %v2260_v28 = vld [vmem:[%s3109_s0 + $0xd8] sm:$0xff]  }
  0x20   : > { %v2261_v29 = vld [vmem:[%s3109_s0 + $0x60] sm:$0xff]   ;;  %v2263_v31 = vld [vmem:[%s3109_s0 + $0x68] sm:$0xff]   ;;  %v2265_v33 = vld [vmem:[%s3109_s0 + $0x70] sm:$0xff]  }
  0x21   : > { %2136 = vmatpush3.bf16.msra.mxu0 %v570_v6  ;;  %2206 = vmatpush3.bf16.msra.mxu1 %v570_v6  ;;  %v2262_v30 = vld [vmem:[%s3109_s0 + $0xe0] sm:$0xff]   ;;  %v2264_v32 = vld [vmem:[%s3109_s0 + $0xe8] sm:$0xff]   ;;  %v2266_v34 = vld [vmem:[%s3109_s0 + $0xf0] sm:$0xff]  }
  0x22   : > { %v2267_v35 = vld [vmem:[%s3109_s0 + $0x78] sm:$0xff]  }
  0x23   : > { %v2268_v36 = vld [vmem:[%s3109_s0 + $0xf8] sm:$0xff]  }
  0x24   : > { %2138 = vmatmul.mubr.msk.bf16.vlgmr.msra.gmra.mrb[0].mxu0 %vm471_vm0, %v2239_v7  ;;  %2170 = vmatmul.mubr.msk.bf16.vlgmr.msra.gmra.mrb[0].mxu1 %vm471_vm0, %v2240_v8 }
  0x25   : > { %2141 = vmatprep.mubr.msk.bf16.mxu0 %vm471_vm0, %v2241_v9  ;;  %2173 = vmatprep.mubr.msk.bf16.mxu1 %vm471_vm0, %v2242_v10 }
  0x2c   : > { %2142 = vmatmul.mubr.msk.bf16.gmra.mrb[4].mxu0 %vm471_vm0, %v2243_v11  ;;  %2174 = vmatmul.mubr.msk.bf16.gmra.mrb[4].mxu1 %vm471_vm0, %v2244_v12 }
  0x2d   : > { %2145 = vmatprep.mubr.msk.bf16.mxu0 %vm471_vm0, %v2245_v13  ;;  %2177 = vmatprep.mubr.msk.bf16.mxu1 %vm471_vm0, %v2246_v14 }
  0x34   : > { %2146 = vmatmul.mubr.msk.bf16.gmra.mrb[8].mxu0 %vm471_vm0, %v2247_v15  ;;  %2178 = vmatmul.mubr.msk.bf16.gmra.mrb[8].mxu1 %vm471_vm0, %v2248_v16 }
  0x35   : > { %2149 = vmatprep.mubr.msk.bf16.mxu0 %vm471_vm0, %v2249_v17  ;;  %2181 = vmatprep.mubr.msk.bf16.mxu1 %vm471_vm0, %v2250_v18 }
  0x3c   : > { %2150 = vmatmul.mubr.msk.bf16.gmra.mrb[12].mxu0 %vm471_vm0, %v2251_v19  ;;  %2182 = vmatmul.mubr.msk.bf16.gmra.mrb[12].mxu1 %vm471_vm0, %v2252_v20 }
  0x3d   : > { %2153 = vmatprep.mubr.msk.bf16.mxu0 %vm471_vm0, %v2253_v21  ;;  %2185 = vmatprep.mubr.msk.bf16.mxu1 %vm471_vm0, %v2254_v22 }
  0x44   : > { %2154 = vmatmul.mubr.msk.bf16.gmra.mrb[16].mxu0 %vm471_vm0, %v2255_v23  ;;  %2186 = vmatmul.mubr.msk.bf16.gmra.mrb[16].mxu1 %vm471_vm0, %v2256_v24 }
  0x45   : > { %2157 = vmatprep.mubr.msk.bf16.mxu0 %vm471_vm0, %v2257_v25  ;;  %2189 = vmatprep.mubr.msk.bf16.mxu1 %vm471_vm0, %v2258_v26 }
  0x4c   : > { %2158 = vmatmul.mubr.msk.bf16.gmra.mrb[20].mxu0 %vm471_vm0, %v2259_v27  ;;  %2190 = vmatmul.mubr.msk.bf16.gmra.mrb[20].mxu1 %vm471_vm0, %v2260_v28 }
  0x4d   : > { %2161 = vmatprep.mubr.msk.bf16.mxu0 %vm471_vm0, %v2261_v29  ;;  %2193 = vmatprep.mubr.msk.bf16.mxu1 %vm471_vm0, %v2262_v30 }
  0x54   : > { %2162 = vmatmul.mubr.msk.bf16.gmra.mrb[24].mxu0 %vm471_vm0, %v2263_v31  ;;  %2194 = vmatmul.mubr.msk.bf16.gmra.mrb[24].mxu1 %vm471_vm0, %v2264_v32 }
  0x55   : > { %2165 = vmatprep.mubr.msk.bf16.mxu0 %vm471_vm0, %v2265_v33  ;;  %2197 = vmatprep.mubr.msk.bf16.mxu1 %vm471_vm0, %v2266_v34 }
  0x5c   : > { %2166 = vmatmul.mubr.msk.bf16.gmra.mrb[28].mxu0 %vm471_vm0, %v2267_v35  ;;  %2198 = vmatmul.mubr.msk.bf16.gmra.mrb[28].mxu1 %vm471_vm0, %v2268_v36 }
  0xf7   : > { %v2479_v37 = vpop.f32.mrb[0].mxu0  ;;  %v2481_v38 = vpop.f32.mrb[0].mxu1 }
  0xf8   : > { %3140 = vst [vmem:[#allocation6_spill] sm:$0xff] %v2479_v37  ;;  %v2483_v39 = vpop.f32.mrb[1].mxu0  ;;  %v2485_v40 = vpop.f32.mrb[1].mxu1 }
  0xf9   : > { %3141 = vst [vmem:[#allocation7_spill] sm:$0xff] %v2483_v39  ;;  %v2487_v41 = vpop.f32.mrb[2].mxu0  ;;  %v2489_v42 = vpop.f32.mrb[2].mxu1 }
  0xfa   : > { %v2491_v43 = vpop.f32.mrb[3].mxu0  ;;  %v2493_v44 = vpop.f32.mrb[3].mxu1 }
  0xfb   : > { %3142 = vst [vmem:[#allocation8_spill] sm:$0xff] %v2491_v43 }
  0xff   : > { %v2495_v45 = vpop.f32.mrb[4].mxu0  ;;  %v2497_v46 = vpop.f32.mrb[4].mxu1 }
 0x100   : > { %v2499_v47 = vpop.f32.mrb[5].mxu0  ;;  %v2501_v48 = vpop.f32.mrb[5].mxu1 }
 0x101   : > { %v2503_v49 = vpop.f32.mrb[6].mxu0  ;;  %v2505_v50 = vpop.f32.mrb[6].mxu1 }
 0x102   : > { %v2507_v51 = vpop.f32.mrb[7].mxu0  ;;  %v2509_v52 = vpop.f32.mrb[7].mxu1 }
 0x107   : > { %v2511_v53 = vpop.f32.mrb[8].mxu0  ;;  %v2513_v54 = vpop.f32.mrb[8].mxu1 }
 0x108   : > { %3143 = vst [vmem:[#allocation9_spill] sm:$0xff] %v2513_v54  ;;  %v2515_v55 = vpop.f32.mrb[9].mxu0  ;;  %v2517_v56 = vpop.f32.mrb[9].mxu1 }
 0x109   : > { %v2519_v57 = vpop.f32.mrb[10].mxu0  ;;  %v2521_v58 = vpop.f32.mrb[10].mxu1 }
 0x10a   : > { %3144 = vst [vmem:[#allocation10_spill] sm:$0xff] %v2521_v58  ;;  %v2523_v59 = vpop.f32.mrb[11].mxu0  ;;  %v2525_v60 = vpop.f32.mrb[11].mxu1 }
 0x10b   : > { %3145 = vst [vmem:[#allocation11_spill] sm:$0xff] %v2525_v60 }
 0x10f   : > { %v2527_v61 = vpop.f32.mrb[12].mxu0  ;;  %v2529_v62 = vpop.f32.mrb[12].mxu1 }
 0x110   : > { %3146 = vst [vmem:[#allocation12_spill] sm:$0xff] %v2529_v62  ;;  %v2531_v63 = vpop.f32.mrb[13].mxu0  ;;  %v2533_v0 = vpop.f32.mrb[13].mxu1 }
 0x111   : > { %3147 = vst [vmem:[#allocation13_spill] sm:$0xff] %v2533_v0  ;;  %v2535_v1 = vpop.f32.mrb[14].mxu0  ;;  %v2537_v2 = vpop.f32.mrb[14].mxu1 }
 0x112   : > { %3148 = vst [vmem:[#allocation14_spill] sm:$0xff] %v2537_v2  ;;  %v2539_v3 = vpop.f32.mrb[15].mxu0  ;;  %v2541_v4 = vpop.f32.mrb[15].mxu1 }
 0x113   : > { %3149 = vst [vmem:[#allocation15_spill] sm:$0xff] %v2541_v4 }
 0x117   : > { %v2543_v5 = vpop.f32.mrb[16].mxu0  ;;  %v2545_v6 = vpop.f32.mrb[16].mxu1 }
 0x118   : > { %3150 = vst [vmem:[#allocation16_spill] sm:$0xff] %v2545_v6  ;;  %v2547_v7 = vpop.f32.mrb[17].mxu0  ;;  %v2549_v8 = vpop.f32.mrb[17].mxu1 }
 0x119   : > { %3151 = vst [vmem:[#allocation17_spill] sm:$0xff] %v2549_v8  ;;  %v2551_v9 = vpop.f32.mrb[18].mxu0  ;;  %v2553_v10 = vpop.f32.mrb[18].mxu1 }
 0x11a   : > { %3152 = vst [vmem:[#allocation18_spill] sm:$0xff] %v2553_v10  ;;  %v2555_v11 = vpop.f32.mrb[19].mxu0  ;;  %v2557_v12 = vpop.f32.mrb[19].mxu1 }
 0x11b   : > { %3153 = vst [vmem:[#allocation19_spill] sm:$0xff] %v2557_v12 }
 0x11f   : > { %v2559_v13 = vpop.f32.mrb[20].mxu0  ;;  %v2561_v14 = vpop.f32.mrb[20].mxu1 }
 0x120   : > { %3154 = vst [vmem:[#allocation20_spill] sm:$0xff] %v2561_v14  ;;  %v2563_v15 = vpop.f32.mrb[21].mxu0  ;;  %v2565_v16 = vpop.f32.mrb[21].mxu1  ;;  %v938_v14 = vmul.f32 (!%p1766_p5), %v2491_v43, %v2491_v43 }
 0x121   : > { %3155 = vst [vmem:[#allocation21_spill] sm:$0xff] %v2565_v16  ;;  %v2567_v17 = vpop.f32.mrb[22].mxu0  ;;  %v2569_v18 = vpop.f32.mrb[22].mxu1 }
 0x122   : > { %3156 = vst [vmem:[#allocation22_spill] sm:$0xff] %v2569_v18  ;;  %v2571_v19 = vpop.f32.mrb[23].mxu0  ;;  %v2573_v20 = vpop.f32.mrb[23].mxu1  ;;  %v937_v18 = vmul.f32 (!%p1766_p5), %v2483_v39, %v2483_v39 }
 0x123   : > { %3157 = vst [vmem:[#allocation23_spill] sm:$0xff] %v2573_v20 }
 0x127   : > { %v2575_v21 = vpop.f32.mrb[24].mxu0  ;;  %v2577_v22 = vpop.f32.mrb[24].mxu1 }
 0x128   : > { %3158 = vst [vmem:[#allocation24_spill] sm:$0xff] %v2577_v22  ;;  %v2579_v23 = vpop.f32.mrb[25].mxu0  ;;  %v2581_v24 = vpop.f32.mrb[25].mxu1 }
 0x129   : > { %3159 = vst [vmem:[#allocation25_spill] sm:$0xff] %v2581_v24  ;;  %v2583_v25 = vpop.f32.mrb[26].mxu0  ;;  %v2585_v26 = vpop.f32.mrb[26].mxu1 }
 0x12a   : > { %3160 = vst [vmem:[#allocation26_spill] sm:$0xff] %v2585_v26  ;;  %v2587_v27 = vpop.f32.mrb[27].mxu0  ;;  %v2589_v28 = vpop.f32.mrb[27].mxu1  ;;  %v865_v26 = vadd.f32 (!%p1766_p5), %v2491_v43, %v2483_v39 }
 0x12b   : > { %3161 = vst [vmem:[#allocation27_spill] sm:$0xff] %v2589_v28 }
 0x12d   : > { %863 = sbr.rel (%p1766_p5) target bundleno = 455 (0x1c7), region = 44 }
 0x12f   : > { %v2591_v29 = vpop.f32.mrb[28].mxu0  ;;  %v2593_v30 = vpop.f32.mrb[28].mxu1 }
 0x130   : > { %3162 = vst [vmem:[#allocation28_spill] sm:$0xff] %v2593_v30  ;;  %v2595_v31 = vpop.f32.mrb[29].mxu0  ;;  %v2597_v32 = vpop.f32.mrb[29].mxu1  ;;  %v866_v30 = vadd.f32 (!%p1766_p5), %v2479_v37, %v865_v26 }
 0x131   : > { %3163 = vst [vmem:[#allocation29_spill] sm:$0xff] %v2597_v32  ;;  %v2599_v33 = vpop.f32.mrb[30].mxu0  ;;  %v2601_v34 = vpop.f32.mrb[30].mxu1 }
 0x132   : > { %3164 = vst [vmem:[#allocation30_spill] sm:$0xff] %v2601_v34  ;;  %v2603_v35 = vpop.f32.mrb[31].mxu0  ;;  %v2605_v36 = vpop.f32.mrb[31].mxu1  ;;  %v867_v22 = vadd.f32 (!%p1766_p5), %v2487_v41, %v866_v30  ;;  %v939_v30 = vmul.f32 (!%p1766_p5), %v2479_v37, %v2479_v37 }
 0x133   : > { %3165 = vst [vmem:[#allocation31_spill] sm:$0xff] %v2605_v36 }
 0x134   : > { %v868_v32 = vadd.f32 %v867_v22, %v2499_v47 }
 0x136   : > { %v869_v28 = vadd.f32 %v868_v32, %v2507_v51  ;;  %v1001_v32 = vadd.f32 %v938_v14, %v937_v18  ;;  %v944_v18 = vmul.f32 %v2503_v49, %v2503_v49 }
 0x138   : > { %v870_v34 = vadd.f32 %v2495_v45, %v869_v28  ;;  %v940_v28 = vmul.f32 %v2487_v41, %v2487_v41  ;;  %v1002_v39 = vadd.f32 %v1001_v32, %v939_v30  ;;  %v945_v32 = vmul.f32 %v2515_v55, %v2515_v55 }
 0x13a   : > { %v871_v24 = vadd.f32 %v2503_v49, %v870_v34  ;;  %v1003_v43 = vadd.f32 %v1002_v39, %v940_v28 }
 0x13c   : > { %v872_v36 = vadd.f32 %v871_v24, %v2515_v55  ;;  %v941_v24 = vmul.f32 %v2499_v47, %v2499_v47 }
 0x13e   : > { %v873_v26 = vadd.f32 %v872_v36, %v2523_v59  ;;  %v942_v36 = vmul.f32 %v2507_v51, %v2507_v51  ;;  %v1004_v16 = vadd.f32 %v1003_v43, %v941_v24 }
 0x140   : > { %v874_v22 = vadd.f32 %v2511_v53, %v873_v26  ;;  %v943_v26 = vmul.f32 %v2495_v45, %v2495_v45 }
 0x142   : > { %v875_v34 = vadd.f32 %v2519_v57, %v874_v22  ;;  %v1005_v22 = vadd.f32 %v1004_v16, %v942_v36  ;;  %v948_v36 = vmul.f32 %v2519_v57, %v2519_v57 }
 0x144   : > { %v876_v20 = vadd.f32 %v875_v34, %v2531_v63  ;;  %v1006_v34 = vadd.f32 %v1005_v22, %v943_v26  ;;  %v949_v22 = vmul.f32 %v2531_v63, %v2531_v63 }
 0x146   : > { %v877_v37 = vadd.f32 %v876_v20, %v2539_v3  ;;  %v946_v20 = vmul.f32 %v2523_v59, %v2523_v59  ;;  %v1007_v28 = vadd.f32 %v1006_v34, %v944_v18  ;;  %v950_v34 = vmul.f32 %v2539_v3, %v2539_v3 }
 0x148   : > { %v878_v14 = vadd.f32 %v2527_v61, %v877_v37  ;;  %v947_v37 = vmul.f32 %v2511_v53, %v2511_v53  ;;  %v1008_v24 = vadd.f32 %v1007_v28, %v945_v32  ;;  %v951_v28 = vmul.f32 %v2527_v61, %v2527_v61 }
 0x14a   : > { %v879_v30 = vadd.f32 %v2535_v1, %v878_v14  ;;  %v1009_v14 = vadd.f32 %v1008_v24, %v946_v20  ;;  %v952_v24 = vmul.f32 %v2535_v1, %v2535_v1 }
 0x14c   : > { %v880_v39 = vadd.f32 %v879_v30, %v2547_v7  ;;  %v1010_v30 = vadd.f32 %v1009_v14, %v947_v37  ;;  %v953_v14 = vmul.f32 %v2547_v7, %v2547_v7 }
 0x14e   : > { %v881_v43 = vadd.f32 %v880_v39, %v2555_v11  ;;  %v1011_v39 = vadd.f32 %v1010_v30, %v948_v36  ;;  %v954_v30 = vmul.f32 %v2555_v11, %v2555_v11 }
 0x150   : > { %v882_v16 = vadd.f32 %v2543_v5, %v881_v43  ;;  %v1012_v43 = vadd.f32 %v1011_v39, %v949_v22  ;;  %v955_v39 = vmul.f32 %v2543_v5, %v2543_v5 }
 0x152   : > { %v883_v26 = vadd.f32 %v2551_v9, %v882_v16  ;;  %v1013_v16 = vadd.f32 %v1012_v43, %v950_v34  ;;  %v956_v43 = vmul.f32 %v2551_v9, %v2551_v9 }
 0x154   : > { %v884_v18 = vadd.f32 %v883_v26, %v2563_v15  ;;  %v1014_v26 = vadd.f32 %v1013_v16, %v951_v28  ;;  %v957_v16 = vmul.f32 %v2563_v15, %v2563_v15 }
 0x156   : > { %v885_v32 = vadd.f32 %v884_v18, %v2571_v19  ;;  %v1015_v18 = vadd.f32 %v1014_v26, %v952_v24  ;;  %v958_v26 = vmul.f32 %v2571_v19, %v2571_v19 }
 0x158   : > { %v886_v20 = vadd.f32 %v2559_v13, %v885_v32  ;;  %v1016_v32 = vadd.f32 %v1015_v18, %v953_v14  ;;  %v959_v18 = vmul.f32 %v2559_v13, %v2559_v13 }
 0x15a   : > { %v887_v37 = vadd.f32 %v2567_v17, %v886_v20  ;;  %v1017_v20 = vadd.f32 %v1016_v32, %v954_v30  ;;  %v960_v32 = vmul.f32 %v2567_v17, %v2567_v17 }
 0x15c   : > { %v888_v36 = vadd.f32 %v887_v37, %v2579_v23  ;;  %v1018_v37 = vadd.f32 %v1017_v20, %v955_v39  ;;  %v961_v20 = vmul.f32 %v2579_v23, %v2579_v23 }
 0x15e   : > { %v889_v22 = vadd.f32 %v888_v36, %v2587_v27  ;;  %v1019_v36 = vadd.f32 %v1018_v37, %v956_v43  ;;  %v962_v37 = vmul.f32 %v2587_v27, %v2587_v27 }
 0x160   : > { %v890_v34 = vadd.f32 %v2575_v21, %v889_v22  ;;  %v1020_v22 = vadd.f32 %v1019_v36, %v957_v16  ;;  %v963_v36 = vmul.f32 %v2575_v21, %v2575_v21 }
 0x162   : > { %v891_v28 = vadd.f32 %v2583_v25, %v890_v34  ;;  %v1021_v34 = vadd.f32 %v1020_v22, %v958_v26  ;;  %v964_v22 = vmul.f32 %v2583_v25, %v2583_v25 }
 0x164   : > { %v892_v24 = vadd.f32 %v891_v28, %v2595_v31  ;;  %v1022_v28 = vadd.f32 %v1021_v34, %v959_v18  ;;  %v965_v34 = vmul.f32 %v2595_v31, %v2595_v31 }
 0x166   : > { %v893_v14 = vadd.f32 %v892_v24, %v2603_v35  ;;  %v1023_v24 = vadd.f32 %v1022_v28, %v960_v32  ;;  %v966_v28 = vmul.f32 %v2603_v35, %v2603_v35 }
 0x168   : > { %v894_v30 = vadd.f32 %v2591_v29, %v893_v14  ;;  %v1024_v14 = vadd.f32 %v1023_v24, %v961_v20  ;;  %v967_v24 = vmul.f32 %v2591_v29, %v2591_v29 }
 0x16a   : > { %v895_v39 = vadd.f32 %v2599_v33, %v894_v30  ;;  %v1025_v30 = vadd.f32 %v1024_v14, %v962_v37  ;;  %v968_v14 = vmul.f32 %v2599_v33, %v2599_v33 }
 0x16c   : > { %v896_v43 = vadd.f32 %v895_v39, %v2485_v40  ;;  %v1026_v39 = vadd.f32 %v1025_v30, %v963_v36  ;;  %v969_v30 = vmul.f32 %v2485_v40, %v2485_v40 }
 0x16e   : > { %v897_v16 = vadd.f32 %v896_v43, %v2493_v44  ;;  %v1027_v43 = vadd.f32 %v1026_v39, %v964_v22  ;;  %v970_v39 = vmul.f32 %v2493_v44, %v2493_v44 }
 0x170   : > { %v898_v26 = vadd.f32 %v2481_v38, %v897_v16  ;;  %v1028_v16 = vadd.f32 %v1027_v43, %v965_v34  ;;  %v971_v43 = vmul.f32 %v2481_v38, %v2481_v38 }
 0x172   : > { %v899_v18 = vadd.f32 %v2489_v42, %v898_v26  ;;  %v1029_v26 = vadd.f32 %v1028_v16, %v966_v28  ;;  %v972_v16 = vmul.f32 %v2489_v42, %v2489_v42 }
 0x174   : > { %v900_v32 = vadd.f32 %v899_v18, %v2501_v48  ;;  %v1030_v18 = vadd.f32 %v1029_v26, %v967_v24  ;;  %v973_v26 = vmul.f32 %v2501_v48, %v2501_v48 }
 0x176   : > { %v901_v20 = vadd.f32 %v900_v32, %v2509_v52  ;;  %v1031_v32 = vadd.f32 %v1030_v18, %v968_v14  ;;  %v974_v18 = vmul.f32 %v2509_v52, %v2509_v52 }
 0x178   : > { %v902_v37 = vadd.f32 %v2497_v46, %v901_v20  ;;  %v1032_v20 = vadd.f32 %v1031_v32, %v969_v30  ;;  %v975_v32 = vmul.f32 %v2497_v46, %v2497_v46 }
 0x17a   : > { %v903_v36 = vadd.f32 %v2505_v50, %v902_v37  ;;  %v1033_v37 = vadd.f32 %v1032_v20, %v970_v39  ;;  %v976_v20 = vmul.f32 %v2505_v50, %v2505_v50 }
 0x17c   : > { %v904_v22 = vadd.f32 %v903_v36, %v2517_v56  ;;  %v1034_v36 = vadd.f32 %v1033_v37, %v971_v43  ;;  %v977_v37 = vmul.f32 %v2517_v56, %v2517_v56 }
 0x17e   : > { %v905_v34 = vadd.f32 %v904_v22, %v2525_v60  ;;  %v1035_v22 = vadd.f32 %v1034_v36, %v972_v16  ;;  %v978_v36 = vmul.f32 %v2525_v60, %v2525_v60  ;;  %v3166_v60 = vld [vmem:[#allocation21_spill] sm:$0xff] }
 0x180   : > { %v906_v28 = vadd.f32 %v2513_v54, %v905_v34  ;;  %v1036_v34 = vadd.f32 %v1035_v22, %v973_v26  ;;  %v979_v22 = vmul.f32 %v2513_v54, %v2513_v54  ;;  %v3167_v54 = vld [vmem:[#allocation23_spill] sm:$0xff] }
 0x182   : > { %v907_v24 = vadd.f32 %v2521_v58, %v906_v28  ;;  %v1037_v28 = vadd.f32 %v1036_v34, %v974_v18  ;;  %v980_v34 = vmul.f32 %v2521_v58, %v2521_v58  ;;  %v3168_v58 = vld [vmem:[#allocation20_spill] sm:$0xff] }
 0x184   : > { %v908_v14 = vadd.f32 %v907_v24, %v2533_v0  ;;  %v1038_v24 = vadd.f32 %v1037_v28, %v975_v32  ;;  %v981_v28 = vmul.f32 %v2533_v0, %v2533_v0  ;;  %v3169_v0 = vld [vmem:[#allocation22_spill] sm:$0xff] }
 0x186   : > { %v909_v30 = vadd.f32 %v908_v14, %v2541_v4  ;;  %v1039_v14 = vadd.f32 %v1038_v24, %v976_v20  ;;  %v982_v24 = vmul.f32 %v2541_v4, %v2541_v4  ;;  %v3170_v4 = vld [vmem:[#allocation25_spill] sm:$0xff] }
 0x188   : > { %v910_v39 = vadd.f32 %v2529_v62, %v909_v30  ;;  %v1040_v30 = vadd.f32 %v1039_v14, %v977_v37  ;;  %v983_v14 = vmul.f32 %v2529_v62, %v2529_v62  ;;  %v3171_v62 = vld [vmem:[#allocation27_spill] sm:$0xff] }
 0x18a   : > { %v911_v43 = vadd.f32 %v2537_v2, %v910_v39  ;;  %v1041_v39 = vadd.f32 %v1040_v30, %v978_v36  ;;  %v984_v30 = vmul.f32 %v2537_v2, %v2537_v2  ;;  %v3172_v2 = vld [vmem:[#allocation24_spill] sm:$0xff] }
 0x18c   : > { %v912_v16 = vadd.f32 %v911_v43, %v2549_v8  ;;  %v1042_v43 = vadd.f32 %v1041_v39, %v979_v22  ;;  %v985_v39 = vmul.f32 %v2549_v8, %v2549_v8  ;;  %v3173_v8 = vld [vmem:[#allocation26_spill] sm:$0xff] }
 0x18e   : > { %v913_v26 = vadd.f32 %v912_v16, %v2557_v12  ;;  %v1043_v16 = vadd.f32 %v1042_v43, %v980_v34  ;;  %v986_v43 = vmul.f32 %v2557_v12, %v2557_v12  ;;  %v3174_v12 = vld [vmem:[#allocation29_spill] sm:$0xff] }
 0x190   : > { %v914_v18 = vadd.f32 %v2545_v6, %v913_v26  ;;  %v1044_v26 = vadd.f32 %v1043_v16, %v981_v28  ;;  %v987_v16 = vmul.f32 %v2545_v6, %v2545_v6  ;;  %v3175_v6 = vld [vmem:[#allocation31_spill] sm:$0xff] }
 0x192   : > { %v915_v32 = vadd.f32 %v2553_v10, %v914_v18  ;;  %v1045_v18 = vadd.f32 %v1044_v26, %v982_v24  ;;  %v988_v26 = vmul.f32 %v2553_v10, %v2553_v10  ;;  %v3176_v10 = vld [vmem:[#allocation28_spill] sm:$0xff] }
 0x194   : > { %v916_v20 = vadd.f32 %v915_v32, %v3166_v60  ;;  %v1046_v32 = vadd.f32 %v1045_v18, %v983_v14  ;;  %v989_v18 = vmul.f32 %v3166_v60, %v3166_v60  ;;  %v3177_v60 = vld [vmem:[#allocation30_spill] sm:$0xff] }
 0x196   : > { %v917_v37 = vadd.f32 %v916_v20, %v3167_v54  ;;  %v1047_v20 = vadd.f32 %v1046_v32, %v984_v30  ;;  %v990_v32 = vmul.f32 %v3167_v54, %v3167_v54 }
 0x198   : > { %v918_v36 = vadd.f32 %v3168_v58, %v917_v37  ;;  %v1048_v37 = vadd.f32 %v1047_v20, %v985_v39  ;;  %v991_v20 = vmul.f32 %v3168_v58, %v3168_v58  ;;  %v995_v58 = vmul.f32 %v3172_v2, %v3172_v2 }
 0x19a   : > { %v919_v22 = vadd.f32 %v3169_v0, %v918_v36  ;;  %v1049_v36 = vadd.f32 %v1048_v37, %v986_v43  ;;  %v992_v37 = vmul.f32 %v3169_v0, %v3169_v0  ;;  %v996_v0 = vmul.f32 %v3173_v8, %v3173_v8 }
 0x19c   : > { %v920_v34 = vadd.f32 %v919_v22, %v3170_v4  ;;  %v1050_v22 = vadd.f32 %v1049_v36, %v987_v16  ;;  %v993_v36 = vmul.f32 %v3170_v4, %v3170_v4  ;;  %v997_v4 = vmul.f32 %v3174_v12, %v3174_v12 }
 0x19e   : > { %v921_v28 = vadd.f32 %v920_v34, %v3171_v62  ;;  %v1051_v34 = vadd.f32 %v1050_v22, %v988_v26  ;;  %v994_v26 = vmul.f32 %v3171_v62, %v3171_v62  ;;  %v998_v62 = vmul.f32 %v3175_v6, %v3175_v6 }
 0x1a0   : > { %v922_v24 = vadd.f32 %v3172_v2, %v921_v28  ;;  %v1052_v28 = vadd.f32 %v1051_v34, %v989_v18  ;;  %v999_v2 = vmul.f32 %v3176_v10, %v3176_v10 }
 0x1a2   : > { %v923_v14 = vadd.f32 %v3173_v8, %v922_v24  ;;  %v1053_v24 = vadd.f32 %v1052_v28, %v990_v32  ;;  %v1000_v8 = vmul.f32 %v3177_v60, %v3177_v60 }
 0x1a4   : > { %v924_v30 = vadd.f32 %v923_v14, %v3174_v12  ;;  %v1054_v14 = vadd.f32 %v1053_v24, %v991_v20 }
 0x1a6   : > { %v925_v39 = vadd.f32 %v924_v30, %v3175_v6  ;;  %v1055_v22 = vadd.f32 %v1054_v14, %v992_v37  ;;  %v864_v37 = vld [vmem:[#allocation2] sm:$0x1] }
 0x1a8   : > { %v926_v43 = vadd.f32 %v3176_v10, %v925_v39  ;;  %v1056_v18 = vadd.f32 %v1055_v22, %v993_v36 }
 0x1aa   : > { %v927_v16 = vadd.f32 %v3177_v60, %v926_v43  ;;  %v1057_v32 = vadd.f32 %v1056_v18, %v994_v26  ;;  %v936_v18 = vld [vmem:[#allocation3] sm:$0x1] }
 0x1ac   : > { %v928_v54 = vrot.slane %v927_v16, 4  ;;  %v1058_v20 = vadd.f32 %v1057_v32, %v995_v58 }
 0x1ae   : > { %v929_v30 = vadd.f32 %v928_v54, %v927_v16  ;;  %v1059_v43 = vadd.f32 %v1058_v20, %v996_v0 }
 0x1b0   : > { %v930_v34 = vrot.slane %v929_v30, 2  ;;  %v1060_v16 = vadd.f32 %v1059_v43, %v997_v4 }
 0x1b2   : > { %v931_v39 = vadd.f32 %v930_v34, %v929_v30  ;;  %v1061_v14 = vadd.f32 %v1060_v16, %v998_v62 }
 0x1b4   : > { %v932_v28 = vrot.slane %v931_v39, 1  ;;  %v1062_v54 = vadd.f32 %v1061_v14, %v999_v2 }
 0x1b6   : > { %v933_v24 = vadd.f32 %v932_v28, %v931_v39  ;;  %v1063_v12 = vadd.f32 %v1062_v54, %v1000_v8 }
 0x1b8   : > { %v934_v36 = vadd.f32 %v933_v24, %v864_v37  ;;  %v1064_v26 = vrot.slane %v1063_v12, 4 }
 0x1ba   : > { %935 = vst [vmem:[#allocation2] sm:$0x1] %v934_v36  ;;  %v1065_v22 = vadd.f32 %v1064_v26, %v1063_v12 }
 0x1bc   : > { %v1066_v30 = vrot.slane %v1065_v22, 2 }
 0x1be   : > { %v1067_v58 = vadd.f32 %v1066_v30, %v1065_v22 }
 0x1c0   : > { %v1068_v6 = vrot.slane %v1067_v58, 1 }
 0x1c2   : > { %v1069_v34 = vadd.f32 %v1068_v6, %v1067_v58 }
 0x1c4   : > { %v1070_v0 = vadd.f32 %v1069_v34, %v936_v18 }
 0x1c6   : > { %1071 = vst [vmem:[#allocation3] sm:$0x1] %v1070_v0 }
 0x1c7 PF: > { %p1072_p6 = scmp.eq.s32.totalorder %s2285_s15, 1 }
 0x1c8   : > { %v1077_v10 = vld [vmem:[#allocation2] sm:$0x1] (%p1072_p6) }
 0x1c9   : > { %1076 = sbr.rel (!%p1072_p6) target bundleno = 488 (0x1e8), region = 48  ;;  %v1078_v60 = vmul.f32 (%p1072_p6), 0.001953125, %v1077_v10  ;;  %v1084_v43 = vld [vmem:[%s3111_s2] sm:$0x1] (%p1072_p6) }
 0x1ca   : > { %v1089_v2 = vld [vmem:[%s3112_s3] sm:$0x1] (%p1072_p6) }
 0x1cb   : > { %v1081_v4 = vmul.f32 (%p1072_p6), %v1078_v60, %v1078_v60 }
 0x1cd   : > { %v1079_v32 = vld [vmem:[#allocation3] sm:$0x1] (%p1072_p6) }
 0x1ce   : > { %v1080_v39 = vmul.f32 (%p1072_p6), 0.001953125, %v1079_v32 }
 0x1d0   : > { %v1082_v20 = vsub.f32 %v1080_v39, %v1081_v4 }
 0x1d2   : > { %v1083_v28 = vmax.f32 %v1082_v20, 0.0 }
 0x1d4   : > { %v1085_v62 = vadd.f32 1e-05, %v1083_v28 }
 0x1d6   : > { %2269 = vrsqrt.f32 %v1085_v62 }
 0x1e0   : > { %v2270_v37 = vpop.eup %2269 }
 0x1e1   : > { %v1087_v24 = vmul.f32 %v2270_v37, %v1084_v43 }
 0x1e3   : > { %1088 = vst [vmem:[#allocation4] sm:$0x1] %v1087_v24  ;;  %v1090_v16 = vmul.f32 %v1087_v24, %v1078_v60 }
 0x1e5   : > { %v1091_v36 = vsub.f32 %v1089_v2, %v1090_v16 }
 0x1e7   : > { %1092 = vst [vmem:[#allocation5] sm:$0x1] %v1091_v36 }
 0x1e8 PF: > { %p1768_p7 = scmp.ne.s32.totalorder %s2285_s15, 1 }
 0x1e9   : > { %v3178_v54 = vld [vmem:[#allocation7_spill] sm:$0xff] (!%p1768_p7)  ;;  %v3179_v26 = vld [vmem:[#allocation8_spill] sm:$0xff] (!%p1768_p7)  ;;  %v3180_v30 = vld [vmem:[#allocation6_spill] sm:$0xff] (!%p1768_p7) }
 0x1ea   : > { %1095 = sbr.rel (%p1768_p7) target bundleno = 554 (0x22a), region = 52  ;;  %v2808_v8 = vld [vmem:[#allocation4] ss:$0 sm:$0xff] (!%p1768_p7) }
 0x1eb   : > { %v1103_v12 = vmul.f32 (!%p1768_p7), %v2808_v8, %v3178_v54  ;;  %v1104_v22 = vmul.f32 (!%p1768_p7), %v2808_v8, %v3179_v26  ;;  %v1105_v58 = vmul.f32 (!%p1768_p7), %v3180_v30, %v2808_v8  ;;  %v1106_v6 = vmul.f32 (!%p1768_p7), %v2487_v41, %v2808_v8 }
 0x1ec   : > { %v1107_v18 = vmul.f32 (!%p1768_p7), %v2808_v8, %v2499_v47  ;;  %v1108_v34 = vmul.f32 (!%p1768_p7), %v2808_v8, %v2507_v51  ;;  %v1109_v0 = vmul.f32 (!%p1768_p7), %v2495_v45, %v2808_v8  ;;  %v1110_v10 = vmul.f32 (!%p1768_p7), %v2503_v49, %v2808_v8 }
 0x1ed   : > { %v1111_v54 = vmul.f32 (!%p1768_p7), %v2808_v8, %v2515_v55  ;;  %v1113_v30 = vmul.f32 (!%p1768_p7), %v2511_v53, %v2808_v8  ;;  %v1116_v53 = vmul.f32 (!%p1768_p7), %v2808_v8, %v2539_v3 }
 0x1ee   : > { %v2810_v14 = vld [vmem:[#allocation5] ss:$0 sm:$0xff] (!%p1768_p7) }
 0x1ef   : > { %v1174_v32 = vadd.f32 (!%p1768_p7), %v2810_v14, %v1103_v12  ;;  %v1175_v60 = vadd.f32 (!%p1768_p7), %v2810_v14, %v1104_v22  ;;  %v1176_v39 = vadd.f32 (!%p1768_p7), %v2810_v14, %v1105_v58  ;;  %v1177_v41 = vadd.f32 (!%p1768_p7), %v2810_v14, %v1106_v6 }
 0x1f0   : > { %v1178_v4 = vadd.f32 (!%p1768_p7), %v2810_v14, %v1107_v18  ;;  %v1179_v47 = vadd.f32 (!%p1768_p7), %v2810_v14, %v1108_v34  ;;  %v1180_v51 = vadd.f32 (!%p1768_p7), %v2810_v14, %v1109_v0  ;;  %v1181_v20 = vadd.f32 (!%p1768_p7), %v2810_v14, %v1110_v10 }
 0x1f1   : > { %v1238_v45 = vmax.f32 %v1174_v32, 0.0  ;;  %v1239_v28 = vmax.f32 %v1175_v60, 0.0  ;;  %v1240_v62 = vmax.f32 %v1176_v39, 0.0  ;;  %v1241_v49 = vmax.f32 %v1177_v41, 0.0 }
 0x1f2   : > { %v1242_v43 = vmax.f32 %v1178_v4, 0.0  ;;  %v1243_v37 = vmax.f32 %v1179_v47, 0.0  ;;  %v1244_v24 = vmax.f32 %v1180_v51, 0.0  ;;  %v1245_v2 = vmax.f32 %v1181_v20, 0.0 }
 0x1f3   : > { %v1908_v16 = vpack.c.bf16 %v1239_v28, %v1238_v45  ;;  %v1913_v36 = vpack.c.bf16 %v1241_v49, %v1240_v62  ;;  %v1112_v12 = vmul.f32 %v2808_v8, %v2523_v59  ;;  %v1114_v58 = vmul.f32 %v2519_v57, %v2808_v8 }
 0x1f4   : > { %v1918_v26 = vpack.c.bf16 %v1243_v37, %v1242_v43  ;;  %v1923_v22 = vpack.c.bf16 %v1245_v2, %v1244_v24  ;;  %v1182_v55 = vadd.f32 %v2810_v14, %v1111_v54  ;;  %v1115_v6 = vmul.f32 %v2808_v8, %v2531_v63 }
 0x1f5   : > { %1909 = vst [vmem:[%s3113_s4] sm:$0xff] %v1908_v16   ;;  %2065 = vst [vmem:[%s3113_s4 + $0x8] sm:$0xff] %v1913_v36   ;;  %v1183_v59 = vadd.f32 %v2810_v14, %v1112_v12  ;;  %v1184_v57 = vadd.f32 %v2810_v14, %v1113_v30  ;;  %v1185_v18 = vadd.f32 %v2810_v14, %v1114_v58 }
 0x1f6   : > { %2066 = vst [vmem:[%s3113_s4 + $0x10] sm:$0xff] %v1918_v26   ;;  %2067 = vst [vmem:[%s3113_s4 + $0x18] sm:$0xff] %v1923_v22   ;;  %v1117_v34 = vmul.f32 %v2527_v61, %v2808_v8  ;;  %v1118_v63 = vmul.f32 %v2535_v1, %v2808_v8  ;;  %v1246_v0 = vmax.f32 %v1182_v55, 0.0  ;;  %v1186_v10 = vadd.f32 %v2810_v14, %v1115_v6 }
 0x1f7   : > { %v1247_v3 = vmax.f32 %v1183_v59, 0.0  ;;  %v1187_v32 = vadd.f32 %v2810_v14, %v1116_v53  ;;  %v1248_v60 = vmax.f32 %v1184_v57, 0.0  ;;  %v1249_v39 = vmax.f32 %v1185_v18, 0.0 }
 0x1f8   : > { %v1188_v41 = vadd.f32 %v2810_v14, %v1117_v34  ;;  %v1189_v4 = vadd.f32 %v2810_v14, %v1118_v63  ;;  %v1250_v51 = vmax.f32 %v1186_v10, 0.0  ;;  %v1119_v61 = vmul.f32 %v2808_v8, %v2547_v7 }
 0x1f9   : > { %v1928_v47 = vpack.c.bf16 %v1247_v3, %v1246_v0  ;;  %v1251_v20 = vmax.f32 %v1187_v32, 0.0  ;;  %v1933_v45 = vpack.c.bf16 %v1249_v39, %v1248_v60  ;;  %v1120_v62 = vmul.f32 %v2808_v8, %v2555_v11 }
 0x1fa   : > { %v1252_v1 = vmax.f32 %v1188_v41, 0.0  ;;  %v1253_v28 = vmax.f32 %v1189_v4, 0.0  ;;  %v1190_v43 = vadd.f32 %v2810_v14, %v1119_v61  ;;  %v1121_v37 = vmul.f32 %v2543_v5, %v2808_v8 }
 0x1fb   : > { %2068 = vst [vmem:[%s3113_s4 + $0x20] sm:$0xff] %v1928_v47   ;;  %v1938_v49 = vpack.c.bf16 %v1251_v20, %v1250_v51  ;;  %v1122_v24 = vmul.f32 %v2551_v9, %v2808_v8  ;;  %2069 = vst [vmem:[%s3113_s4 + $0x28] sm:$0xff] %v1933_v45   ;;  %v1191_v11 = vadd.f32 %v2810_v14, %v1120_v62 }
 0x1fc   : > { %v1943_v7 = vpack.c.bf16 %v1253_v28, %v1252_v1  ;;  %v1123_v2 = vmul.f32 %v2808_v8, %v2563_v15  ;;  %v1124_v16 = vmul.f32 %v2808_v8, %v2571_v19  ;;  %v1254_v5 = vmax.f32 %v1190_v43, 0.0 }
 0x1fd   : > { %2070 = vst [vmem:[%s3113_s4 + $0x30] sm:$0xff] %v1938_v49   ;;  %v1192_v9 = vadd.f32 %v2810_v14, %v1121_v37  ;;  %v1193_v36 = vadd.f32 %v2810_v14, %v1122_v24  ;;  %v1125_v54 = vmul.f32 %v2559_v13, %v2808_v8  ;;  %v1255_v15 = vmax.f32 %v1191_v11, 0.0 }
 0x1fe   : > { %2071 = vst [vmem:[%s3113_s4 + $0x38] sm:$0xff] %v1943_v7   ;;  %v1194_v12 = vadd.f32 %v2810_v14, %v1123_v2  ;;  %v1195_v19 = vadd.f32 %v2810_v14, %v1124_v16  ;;  %v1126_v26 = vmul.f32 %v2567_v17, %v2808_v8  ;;  %v1127_v55 = vmul.f32 %v2808_v8, %v2579_v23 }
 0x1ff   : > { %v1256_v22 = vmax.f32 %v1192_v9, 0.0  ;;  %v1257_v30 = vmax.f32 %v1193_v36, 0.0  ;;  %v1196_v58 = vadd.f32 %v2810_v14, %v1125_v54  ;;  %v1948_v13 = vpack.c.bf16 %v1255_v15, %v1254_v5 }
 0x200   : > { %v1258_v59 = vmax.f32 %v1194_v12, 0.0  ;;  %v1259_v6 = vmax.f32 %v1195_v19, 0.0  ;;  %v1197_v53 = vadd.f32 %v2810_v14, %v1126_v26  ;;  %v1128_v34 = vmul.f32 %v2808_v8, %v2587_v27 }
 0x201   : > { %v1953_v57 = vpack.c.bf16 %v1257_v30, %v1256_v22  ;;  %v1260_v18 = vmax.f32 %v1196_v58, 0.0  ;;  %v1198_v63 = vadd.f32 %v2810_v14, %v1127_v55  ;;  %2072 = vst [vmem:[%s3113_s4 + $0x40] sm:$0xff] %v1948_v13   ;;  %v1129_v23 = vmul.f32 %v2575_v21, %v2808_v8 }
 0x202   : > { %v1958_v17 = vpack.c.bf16 %v1259_v6, %v1258_v59  ;;  %v1261_v0 = vmax.f32 %v1197_v53, 0.0  ;;  %v1130_v3 = vmul.f32 %v2583_v25, %v2808_v8  ;;  %v1199_v27 = vadd.f32 %v2810_v14, %v1128_v34  ;;  %v3181_v6 = vld [vmem:[#allocation11_spill] sm:$0xff] }
 0x203   : > { %2073 = vst [vmem:[%s3113_s4 + $0x48] sm:$0xff] %v1953_v57   ;;  %v1262_v10 = vmax.f32 %v1198_v63, 0.0  ;;  %v1131_v32 = vmul.f32 %v2808_v8, %v2595_v31  ;;  %v1132_v60 = vmul.f32 %v2808_v8, %v2603_v35  ;;  %v1200_v25 = vadd.f32 %v2810_v14, %v1129_v23  ;;  %v3183_v63 = vld [vmem:[#allocation10_spill] sm:$0xff] }
 0x204   : > { %2074 = vst [vmem:[%s3113_s4 + $0x50] sm:$0xff] %v1958_v17   ;;  %v1963_v21 = vpack.c.bf16 %v1261_v0, %v1260_v18  ;;  %v1201_v39 = vadd.f32 %v2810_v14, %v1130_v3  ;;  %v1133_v41 = vmul.f32 %v2591_v29, %v2808_v8  ;;  %v1263_v4 = vmax.f32 %v1199_v27, 0.0  ;;  %v3184_v3 = vld [vmem:[#allocation13_spill] sm:$0xff] }
 0x205   : > { %v1202_v47 = vadd.f32 %v2810_v14, %v1131_v32  ;;  %v1203_v31 = vadd.f32 %v2810_v14, %v1132_v60  ;;  %v1134_v35 = vmul.f32 %v2599_v33, %v2808_v8  ;;  %v1264_v51 = vmax.f32 %v1200_v25, 0.0 }
 0x206   : > { %2075 = vst [vmem:[%s3113_s4 + $0x58] sm:$0xff] %v1963_v21   ;;  %v1265_v20 = vmax.f32 %v1201_v39, 0.0  ;;  %v1204_v61 = vadd.f32 %v2810_v14, %v1133_v41  ;;  %v1135_v45 = vmul.f32 %v2808_v8, %v2485_v40  ;;  %v1968_v29 = vpack.c.bf16 %v1263_v4, %v1262_v10  ;;  %v3185_v10 = vld [vmem:[#allocation15_spill] sm:$0xff]  ;;  %v3186_v39 = vld [vmem:[#allocation12_spill] sm:$0xff] }
 0x207   : > { %v1266_v1 = vmax.f32 %v1202_v47, 0.0  ;;  %v1267_v28 = vmax.f32 %v1203_v31, 0.0  ;;  %v1205_v62 = vadd.f32 %v2810_v14, %v1134_v35  ;;  %v1136_v33 = vmul.f32 %v2808_v8, %v2493_v44  ;;  %v3187_v35 = vld [vmem:[#allocation14_spill] sm:$0xff] }
 0x208   : > { %v1973_v49 = vpack.c.bf16 %v1265_v20, %v1264_v51  ;;  %v1268_v43 = vmax.f32 %v1204_v61, 0.0  ;;  %v1206_v37 = vadd.f32 %v2810_v14, %v1135_v45  ;;  %2076 = vst [vmem:[%s3113_s4 + $0x60] sm:$0xff] %v1968_v29   ;;  %v1137_v40 = vmul.f32 %v2481_v38, %v2808_v8  ;;  %v3188_v29 = vld [vmem:[#allocation17_spill] sm:$0xff] }
 0x209   : > { %v1978_v24 = vpack.c.bf16 %v1267_v28, %v1266_v1  ;;  %v1269_v7 = vmax.f32 %v1205_v62, 0.0  ;;  %v1138_v11 = vmul.f32 %v2489_v42, %v2808_v8  ;;  %v1207_v44 = vadd.f32 %v2810_v14, %v1136_v33 }
 0x20a   : > { %2077 = vst [vmem:[%s3113_s4 + $0x68] sm:$0xff] %v1973_v49   ;;  %v1270_v2 = vmax.f32 %v1206_v37, 0.0  ;;  %v1139_v16 = vmul.f32 %v2808_v8, %v2501_v48  ;;  %v1140_v5 = vmul.f32 %v2808_v8, %v2509_v52  ;;  %v1208_v42 = vadd.f32 %v2810_v14, %v1137_v40 }
 0x20b   : > { %2078 = vst [vmem:[%s3113_s4 + $0x70] sm:$0xff] %v1978_v24   ;;  %v1983_v38 = vpack.c.bf16 %v1269_v7, %v1268_v43  ;;  %v1209_v9 = vadd.f32 %v2810_v14, %v1138_v11  ;;  %v1141_v36 = vmul.f32 %v2497_v46, %v2808_v8  ;;  %v1271_v54 = vmax.f32 %v1207_v44, 0.0  ;;  %v3189_v24 = vld [vmem:[#allocation19_spill] sm:$0xff] }
 0x20c   : > { %v1210_v15 = vadd.f32 %v2810_v14, %v1139_v16  ;;  %v1211_v48 = vadd.f32 %v2810_v14, %v1140_v5  ;;  %v1142_v52 = vmul.f32 %v2505_v50, %v2808_v8  ;;  %v1272_v12 = vmax.f32 %v1208_v42, 0.0  ;;  %v3191_v5 = vld [vmem:[#allocation18_spill] sm:$0xff] }
 0x20d   : > { %2079 = vst [vmem:[%s3113_s4 + $0x78] sm:$0xff] %v1983_v38   ;;  %v1273_v19 = vmax.f32 %v1209_v9, 0.0  ;;  %v1212_v26 = vadd.f32 %v2810_v14, %v1141_v36  ;;  %v1143_v22 = vmul.f32 %v2808_v8, %v2517_v56  ;;  %v1988_v46 = vpack.c.bf16 %v1271_v54, %v1270_v2  ;;  %v3182_v56 = vld [vmem:[#allocation9_spill] sm:$0xff]  ;;  %v3190_v2 = vld [vmem:[#allocation16_spill] sm:$0xff] }
 0x20e   : > { %v1274_v30 = vmax.f32 %v1210_v15, 0.0  ;;  %v1275_v58 = vmax.f32 %v1211_v48, 0.0  ;;  %v1213_v55 = vadd.f32 %v2810_v14, %v1142_v52  ;;  %v1144_v50 = vmul.f32 %v2808_v8, %v3181_v6  ;;  %v3192_v36 = vld [vmem:[#allocation21_spill] sm:$0xff]  ;;  %v3193_v15 = vld [vmem:[#allocation23_spill] sm:$0xff] }
 0x20f   : > { %v1993_v13 = vpack.c.bf16 %v1273_v19, %v1272_v12  ;;  %v1276_v59 = vmax.f32 %v1212_v26, 0.0  ;;  %v1214_v53 = vadd.f32 %v2810_v14, %v1143_v22  ;;  %2080 = vst [vmem:[%s3113_s4 + $0x80] sm:$0xff] %v1988_v46   ;;  %v1145_v34 = vmul.f32 %v3182_v56, %v2808_v8  ;;  %v3194_v26 = vld [vmem:[#allocation20_spill] sm:$0xff] }
 0x210   : > { %v1998_v57 = vpack.c.bf16 %v1275_v58, %v1274_v30  ;;  %v1277_v18 = vmax.f32 %v1213_v55, 0.0  ;;  %v1146_v17 = vmul.f32 %v3183_v63, %v2808_v8  ;;  %v1215_v0 = vadd.f32 %v2810_v14, %v1144_v50  ;;  %v3195_v55 = vld [vmem:[#allocation22_spill] sm:$0xff] }
 0x211   : > { %2081 = vst [vmem:[%s3113_s4 + $0x88] sm:$0xff] %v1993_v13   ;;  %v1278_v23 = vmax.f32 %v1214_v53, 0.0  ;;  %v1147_v27 = vmul.f32 %v2808_v8, %v3184_v3  ;;  %v1148_v32 = vmul.f32 %v2808_v8, %v3185_v10  ;;  %v1216_v21 = vadd.f32 %v2810_v14, %v1145_v34  ;;  %v3196_v53 = vld [vmem:[#allocation25_spill] sm:$0xff] }
 0x212   : > { %2082 = vst [vmem:[%s3113_s4 + $0x90] sm:$0xff] %v1998_v57   ;;  %v2003_v60 = vpack.c.bf16 %v1277_v18, %v1276_v59  ;;  %v1217_v25 = vadd.f32 %v2810_v14, %v1146_v17  ;;  %v1149_v41 = vmul.f32 %v3186_v39, %v2808_v8  ;;  %v1279_v4 = vmax.f32 %v1215_v0, 0.0 }
 0x213   : > { %v1218_v47 = vadd.f32 %v2810_v14, %v1147_v27  ;;  %v1219_v31 = vadd.f32 %v2810_v14, %v1148_v32  ;;  %v1150_v51 = vmul.f32 %v3187_v35, %v2808_v8  ;;  %v1280_v20 = vmax.f32 %v1216_v21, 0.0  ;;  %v3201_v35 = vld [vmem:[#allocation31_spill] sm:$0xff] }
 0x214   : > { %2083 = vst [vmem:[%s3113_s4 + $0x98] sm:$0xff] %v2003_v60   ;;  %v1281_v61 = vmax.f32 %v1217_v25, 0.0  ;;  %v1220_v45 = vadd.f32 %v2810_v14, %v1149_v41  ;;  %v1151_v1 = vmul.f32 %v2808_v8, %v3188_v29  ;;  %v2008_v28 = vpack.c.bf16 %v1279_v4, %v1278_v23  ;;  %v3197_v23 = vld [vmem:[#allocation27_spill] sm:$0xff]  ;;  %v3198_v60 = vld [vmem:[#allocation24_spill] sm:$0xff]  ;;  %v3199_v25 = vld [vmem:[#allocation26_spill] sm:$0xff] }
 0x215   : > { %v1282_v62 = vmax.f32 %v1218_v47, 0.0  ;;  %v1283_v49 = vmax.f32 %v1219_v31, 0.0  ;;  %v1221_v43 = vadd.f32 %v2810_v14, %v1150_v51  ;;  %v1152_v7 = vmul.f32 %v2808_v8, %v3189_v24  ;;  %v3200_v47 = vld [vmem:[#allocation29_spill] sm:$0xff]  ;;  %v3202_v29 = vld [vmem:[#allocation28_spill] sm:$0xff] }
 0x216   : > { %v2013_v33 = vpack.c.bf16 %v1281_v61, %v1280_v20  ;;  %v1284_v37 = vmax.f32 %v1220_v45, 0.0  ;;  %v1222_v40 = vadd.f32 %v2810_v14, %v1151_v1  ;;  %2084 = vst [vmem:[%s3113_s4 + $0xa0] sm:$0xff] %v2008_v28   ;;  %v1153_v16 = vmul.f32 %v3190_v2, %v2808_v8 }
 0x217   : > { %v2018_v11 = vpack.c.bf16 %v1283_v49, %v1282_v62  ;;  %v1285_v44 = vmax.f32 %v1221_v43, 0.0  ;;  %v1154_v38 = vmul.f32 %v3191_v5, %v2808_v8  ;;  %v1223_v42 = vadd.f32 %v2810_v14, %v1152_v7  ;;  %v3203_v43 = vld [vmem:[#allocation30_spill] sm:$0xff] }
 0x218   : > { %2085 = vst [vmem:[%s3113_s4 + $0xa8] sm:$0xff] %v2013_v33   ;;  %v1286_v9 = vmax.f32 %v1222_v40, 0.0  ;;  %v1155_v54 = vmul.f32 %v2808_v8, %v3192_v36  ;;  %v1156_v48 = vmul.f32 %v2808_v8, %v3193_v15  ;;  %v1224_v12 = vadd.f32 %v2810_v14, %v1153_v16 }
 0x219   : > { %2086 = vst [vmem:[%s3113_s4 + $0xb0] sm:$0xff] %v2018_v11   ;;  %v2023_v52 = vpack.c.bf16 %v1285_v44, %v1284_v37  ;;  %v1225_v19 = vadd.f32 %v2810_v14, %v1154_v38  ;;  %v1157_v22 = vmul.f32 %v3194_v26, %v2808_v8  ;;  %v1287_v46 = vmax.f32 %v1223_v42, 0.0 }
 0x21a   : > { %v1226_v30 = vadd.f32 %v2810_v14, %v1155_v54  ;;  %v1227_v58 = vadd.f32 %v2810_v14, %v1156_v48  ;;  %v1158_v13 = vmul.f32 %v3195_v55, %v2808_v8  ;;  %v1288_v59 = vmax.f32 %v1224_v12, 0.0 }
 0x21b   : > { %2087 = vst [vmem:[%s3113_s4 + $0xb8] sm:$0xff] %v2023_v52   ;;  %v1289_v6 = vmax.f32 %v1225_v19, 0.0  ;;  %v1228_v50 = vadd.f32 %v2810_v14, %v1157_v22  ;;  %v1159_v57 = vmul.f32 %v2808_v8, %v3196_v53  ;;  %v2028_v18 = vpack.c.bf16 %v1287_v46, %v1286_v9 }
 0x21c   : > { %v1290_v56 = vmax.f32 %v1226_v30, 0.0  ;;  %v1291_v34 = vmax.f32 %v1227_v58, 0.0  ;;  %v1229_v63 = vadd.f32 %v2810_v14, %v1158_v13  ;;  %v1160_v3 = vmul.f32 %v2808_v8, %v3197_v23 }
 0x21d   : > { %v2033_v17 = vpack.c.bf16 %v1289_v6, %v1288_v59  ;;  %v1292_v0 = vmax.f32 %v1228_v50, 0.0  ;;  %v1230_v27 = vadd.f32 %v2810_v14, %v1159_v57  ;;  %2088 = vst [vmem:[%s3113_s4 + $0xc0] sm:$0xff] %v2028_v18   ;;  %v1161_v21 = vmul.f32 %v3198_v60, %v2808_v8 }
 0x21e   : > { %v2038_v10 = vpack.c.bf16 %v1291_v34, %v1290_v56  ;;  %v1293_v32 = vmax.f32 %v1229_v63, 0.0  ;;  %v1162_v39 = vmul.f32 %v3199_v25, %v2808_v8  ;;  %v1231_v41 = vadd.f32 %v2810_v14, %v1160_v3 }
 0x21f   : > { %2089 = vst [vmem:[%s3113_s4 + $0xc8] sm:$0xff] %v2033_v17   ;;  %v1294_v4 = vmax.f32 %v1230_v27, 0.0  ;;  %v1163_v31 = vmul.f32 %v2808_v8, %v3200_v47  ;;  %v1164_v51 = vmul.f32 %v2808_v8, %v3201_v35  ;;  %v1232_v61 = vadd.f32 %v2810_v14, %v1161_v21 }
 0x220   : > { %2090 = vst [vmem:[%s3113_s4 + $0xd0] sm:$0xff] %v2038_v10   ;;  %v2043_v20 = vpack.c.bf16 %v1293_v32, %v1292_v0  ;;  %v1233_v45 = vadd.f32 %v2810_v14, %v1162_v39  ;;  %v1165_v1 = vmul.f32 %v3202_v29, %v2808_v8  ;;  %v1295_v28 = vmax.f32 %v1231_v41, 0.0 }
 0x221   : > { %v1234_v62 = vadd.f32 %v2810_v14, %v1163_v31  ;;  %v1235_v49 = vadd.f32 %v2810_v14, %v1164_v51  ;;  %v1166_v33 = vmul.f32 %v3203_v43, %v2808_v8  ;;  %v1296_v37 = vmax.f32 %v1232_v61, 0.0 }
 0x222   : > { %2091 = vst [vmem:[%s3113_s4 + $0xd8] sm:$0xff] %v2043_v20   ;;  %v1297_v24 = vmax.f32 %v1233_v45, 0.0  ;;  %v1236_v7 = vadd.f32 %v2810_v14, %v1165_v1  ;;  %v2048_v40 = vpack.c.bf16 %v1295_v28, %v1294_v4 }
 0x223   : > { %v1298_v11 = vmax.f32 %v1234_v62, 0.0  ;;  %v1299_v44 = vmax.f32 %v1235_v49, 0.0  ;;  %v1237_v2 = vadd.f32 %v2810_v14, %v1166_v33 }
 0x224   : > { %v2053_v16 = vpack.c.bf16 %v1297_v24, %v1296_v37  ;;  %v1300_v5 = vmax.f32 %v1236_v7, 0.0  ;;  %2092 = vst [vmem:[%s3113_s4 + $0xe0] sm:$0xff] %v2048_v40  }
 0x225   : > { %v2058_v8 = vpack.c.bf16 %v1299_v44, %v1298_v11  ;;  %v1301_v38 = vmax.f32 %v1237_v2, 0.0 }
 0x226   : > { %2093 = vst [vmem:[%s3113_s4 + $0xe8] sm:$0xff] %v2053_v16  }
 0x227   : > { %2094 = vst [vmem:[%s3113_s4 + $0xf0] sm:$0xff] %v2058_v8   ;;  %v2063_v42 = vpack.c.bf16 %v1301_v38, %v1300_v5 }
 0x229   : > { %2095 = vst [vmem:[%s3113_s4 + $0xf8] sm:$0xff] %v2063_v42  }
 0x22a PF: > { %s14_s17 = sadd.s32 1, %s2293_s17   ;;  %s3204_s15 = smov %s2289_s16 }
 0x22b   : > { %p11_p8 = scmp.ge.s32.totalorder %s14_s17, 4   ;;  %s3205_s16 = smov %s3207_s18 }
 0x22d   :  { %13 = sbr.rel (!%p11_p8) target bundleno = 2 (0x2), region = 82 }

</bundles_post_ra>
